<compile_context>
chip_gen: v6e
topology: v6e:2x2x1
jax: 0.10.0
libtpu: 0.0.40
codegen_flags: <defaults>
</compile_context>

<pallas_src>
import functools

import jax
import jax.numpy as jnp
from jax.experimental import pallas as pl
from jax.experimental.pallas import tpu as pltpu

EPS = 1e-5  # torch.nn.LayerNorm default


def _round_up(a, b):
    return (a + b - 1) // b * b


def _prenorm_residual_kernel(x_ref, g_ref, b_ref, w_ref, wb_ref, o_ref,
                             normed_ref, *, block_n):
    """Grid = (row_tile i, out-column tile j).

    x_ref:      (br, D)   full-D row tile (resident across j: index_map (i, 0))
    g_ref/b_ref:(1, D)    LayerNorm gamma / beta
    w_ref:      (D, tn)   bf16 weight column tile
    wb_ref:     (1, tn)   Linear bias column tile
    o_ref:      (br, tn)  output tile
    normed_ref: (br, D)   bf16 scratch caching LayerNorm(x) across the j loop
    """
    j = pl.program_id(1)

    # LayerNorm once per row tile (j is the inner, "arbitrary" grid axis).
    @pl.when(j == 0)
    def _compute_layernorm():
        x = x_ref[...].astype(jnp.float32)                    # f32 VPU math
        mean = jnp.mean(x, axis=-1, keepdims=True)
        centered = x - mean
        var = jnp.mean(centered * centered, axis=-1, keepdims=True)
        inv = jax.lax.rsqrt(var + EPS)
        normed = (centered * inv) * g_ref[...].astype(jnp.float32) \
            + b_ref[...].astype(jnp.float32)
        normed_ref[...] = normed.astype(normed_ref.dtype)      # cache as bf16

    # fn: Linear(dim, dim) on the cached bf16 activations (f32 accumulation).
    y = jnp.dot(normed_ref[...], w_ref[...],
                preferred_element_type=jnp.float32)
    y = y + wb_ref[...].astype(jnp.float32)

    # Residual add: slice the matching columns out of the resident x tile.
    full_d = x_ref.shape[1]
    if block_n == full_d:                 # single N tile (e.g. D not 128-mult)
        x_res = x_ref[...]
    else:                                 # tn is a multiple of 128 here
        col0 = pl.multiple_of(j * block_n, 128)
        x_res = x_ref[:, pl.ds(col0, block_n)]

    o_ref[...] = (y + x_res.astype(jnp.float32)).astype(o_ref.dtype)


def prenorm_residual(x, ln_gamma, ln_beta, fn_w, fn_b, *, block_rows=256):
    """x: (B, S, D).  Returns fn(LayerNorm(x)) + x with fn = Linear(D, D)."""
    B, S, D = x.shape
    R = B * S
    x2 = x.reshape(R, D)

    # ---- Row tiling: large tiles, pad the tail (never collapse the grid) ----
    n_row_tiles = -(-R // block_rows)                  # cdiv
    br = _round_up(-(-R // n_row_tiles), 8)            # per-tile rows, 8-aligned
    R_pad = n_row_tiles * br
    if R_pad != R:
        x2 = jnp.pad(x2, ((0, R_pad - R), (0, 0)))     # zero rows -> discarded

    # ---- N tiling of the weight's output columns ----
    if D % 128 == 0:
        tn = 128
        for cand in (512, 256, 128):
            if D % cand == 0:
                tn = cand
                break
        tn = min(tn, D)
    else:
        tn = D            # lane dim must be full extent if not 128-aligned
    n_col_tiles = D // tn

    grid = (n_row_tiles, n_col_tiles)

    g2 = ln_gamma.reshape(1, D)
    b2 = ln_beta.reshape(1, D)
    wb2 = fn_b.reshape(1, D)
    w_bf16 = fn_w.astype(jnp.bfloat16)   # MXU-native; halves weight DMA/VMEM

    itm = x.dtype.itemsize
    cost = pl.CostEstimate(
        flops=2 * R_pad * D * D + 10 * R_pad * D,
        transcendentals=R_pad,
        bytes_accessed=2 * R_pad * D * itm           # x in + out
        + n_row_tiles * D * D * 2                    # weight re-streamed / row tile
        + 3 * D * 4,
    )

    kernel = functools.partial(_prenorm_residual_kernel, block_n=tn)

    out = pl.pallas_call(
        kernel,
        out_shape=jax.ShapeDtypeStruct((R_pad, D), x.dtype),
        grid_spec=pltpu.PrefetchScalarGridSpec(
            num_scalar_prefetch=0,
            grid=grid,
            in_specs=[
                pl.BlockSpec((br, D), lambda i, j: (i, 0)),   # x rows (full D)
                pl.BlockSpec((1, D), lambda i, j: (0, 0)),    # ln gamma
                pl.BlockSpec((1, D), lambda i, j: (0, 0)),    # ln beta
                pl.BlockSpec((D, tn), lambda i, j: (0, j)),   # weight N-tile
                pl.BlockSpec((1, tn), lambda i, j: (0, j)),   # linear bias tile
            ],
            out_specs=pl.BlockSpec((br, tn), lambda i, j: (i, j)),
            scratch_shapes=[pltpu.VMEM((br, D), jnp.bfloat16)],  # cached LN(x)
        ),
        compiler_params=pltpu.CompilerParams(
            dimension_semantics=("parallel", "arbitrary"),
            vmem_limit_bytes=64 * 1024 * 1024,
        ),
        cost_estimate=cost,
    )(x2, g2, b2, w_bf16, wb2)

    return out[:R].reshape(B, S, D)


def prenorm_residual_ref_f32(x, ln_gamma, ln_beta, fn_w, fn_b):
    """Pure-f32 reference matching the PyTorch module semantics."""
    xf = x.astype(jnp.float32)
    mean = jnp.mean(xf, axis=-1, keepdims=True)
    var = jnp.mean((xf - mean) ** 2, axis=-1, keepdims=True)
    normed = (xf - mean) * jax.lax.rsqrt(var + EPS) * ln_gamma + ln_beta
    y = jnp.einsum("bsd,de->bse", normed, fn_w) + fn_b
    return (y + xf).astype(x.dtype)


def prenorm_residual_ref_mixed(x, ln_gamma, ln_beta, fn_w_bf16, fn_b):
    """Reference with the same bf16-input / f32-accumulate matmul as the kernel."""
    xf = x.astype(jnp.float32)
    mean = jnp.mean(xf, axis=-1, keepdims=True)
    var = jnp.mean((xf - mean) ** 2, axis=-1, keepdims=True)
    normed = (xf - mean) * jax.lax.rsqrt(var + EPS) * ln_gamma + ln_beta
    y = jnp.einsum("bsd,de->bse", normed.astype(jnp.bfloat16), fn_w_bf16,
                   preferred_element_type=jnp.float32) + fn_b
    return (y + xf).astype(x.dtype)


if __name__ == "__main__":
    # Small shapes consistent with the module: (batch, seq, dim)
    B, S, D = 2, 8, 32

    key = jax.random.PRNGKey(0)
    kx, kg, kb, kw, kwb = jax.random.split(key, 5)

    x = jax.random.normal(kx, (B, S, D), dtype=jnp.float32)
    # Deterministic parameter init (synthetic, not a checkpoint load).
    ln_gamma = 1.0 + 0.01 * jax.random.normal(kg, (D,), dtype=jnp.float32)
    ln_beta = 0.01 * jax.random.normal(kb, (D,), dtype=jnp.float32)
    fn_w = jax.random.normal(kw, (D, D), dtype=jnp.float32) / jnp.sqrt(D)
    fn_b = 0.01 * jax.random.normal(kwb, (D,), dtype=jnp.float32)

    out = prenorm_residual(x, ln_gamma, ln_beta, fn_w, fn_b)
    out = jax.block_until_ready(out)
    assert out.shape == (B, S, D)

    # Structural check: same mixed-precision recipe (bf16 MXU inputs, f32 acc).
    ref_mixed = prenorm_residual_ref_mixed(
        x, ln_gamma, ln_beta, fn_w.astype(jnp.bfloat16), fn_b)
    assert jnp.allclose(out, ref_mixed, atol=5e-3, rtol=5e-3), \
        "mismatch vs mixed-precision reference"

    # Semantics check vs pure-f32 PyTorch-style reference (tolerance sized for
    # bf16 matmul inputs).
    ref_f32 = prenorm_residual_ref_f32(x, ln_gamma, ln_beta, fn_w, fn_b)
    assert jnp.allclose(out, ref_f32, atol=5e-2, rtol=5e-2), \
        "mismatch vs f32 reference"

    print("KERNEL_OK")
</pallas_src>

<mosaic_0001>
module attributes {stable_mosaic.version = 11 : i64} {
  func.func @_prenorm_residual_kernel(%arg0: i32, %arg1: i32, %arg2: memref<16x32xf32, #tpu.memory_space<vmem>>, %arg3: memref<1x32xf32, #tpu.memory_space<vmem>>, %arg4: memref<1x32xf32, #tpu.memory_space<vmem>>, %arg5: memref<32x32xbf16, #tpu.memory_space<vmem>>, %arg6: memref<1x32xf32, #tpu.memory_space<vmem>>, %arg7: memref<16x32xf32, #tpu.memory_space<vmem>>, %arg8: memref<16x32xbf16, #tpu.memory_space<vmem>>) attributes {dimension_semantics = [#tpu.dimension_semantics<parallel>, #tpu.dimension_semantics<arbitrary>], iteration_bounds = array<i64: 1, 1>, scalar_prefetch = 0 : i64, scratch_operands = 1 : i64, tpu.core_type = #tpu.core_type<tc>, window_params = [{transform_indices = @transform_0, window_bounds = array<i64: 16, 32>}, {pipeline_mode = #tpu.pipeline_mode<synchronous>, transform_indices = @transform_1, window_bounds = array<i64: 1, 32>}, {pipeline_mode = #tpu.pipeline_mode<synchronous>, transform_indices = @transform_2, window_bounds = array<i64: 1, 32>}, {transform_indices = @transform_3, window_bounds = array<i64: 32, 32>}, {transform_indices = @transform_4, window_bounds = array<i64: 1, 32>}, {transform_indices = @transform_5, window_bounds = array<i64: 16, 32>}]} {
    %c0_i32 = arith.constant 0 : i32
    %0 = arith.cmpi eq, %arg1, %c0_i32 : i32
    %1 = arith.extui %0 : i1 to i32
    %c0_i32_0 = arith.constant 0 : i32
    %2 = arith.cmpi ne, %1, %c0_i32_0 : i32
    scf.if %2 {
      %c0_10 = arith.constant 0 : index
      %c0_11 = arith.constant 0 : index
      %12 = vector.load %arg2[%c0_10, %c0_11] : memref<16x32xf32, #tpu.memory_space<vmem>>, vector<16x32xf32>
      %cst_12 = arith.constant dense<0.000000e+00> : vector<16xf32>
      %13 = vector.multi_reduction <add>, %12, %cst_12 [1] : vector<16x32xf32> to vector<16xf32>
      %14 = vector.shape_cast %13 : vector<16xf32> to vector<16x1xf32>
      %cst_13 = arith.constant 3.200000e+01 : f32
      %15 = vector.broadcast %cst_13 : f32 to vector<16x1xf32>
      %16 = arith.divf %14, %15 : vector<16x1xf32>
      %17 = vector.broadcast %16 : vector<16x1xf32> to vector<16x32xf32>
      %18 = arith.subf %12, %17 : vector<16x32xf32>
      %19 = arith.mulf %18, %18 : vector<16x32xf32>
      %cst_14 = arith.constant dense<0.000000e+00> : vector<16xf32>
      %20 = vector.multi_reduction <add>, %19, %cst_14 [1] : vector<16x32xf32> to vector<16xf32>
      %21 = vector.shape_cast %20 : vector<16xf32> to vector<16x1xf32>
      %cst_15 = arith.constant 3.200000e+01 : f32
      %22 = vector.broadcast %cst_15 : f32 to vector<16x1xf32>
      %23 = arith.divf %21, %22 : vector<16x1xf32>
      %cst_16 = arith.constant 9.99999974E-6 : f32
      %24 = vector.broadcast %cst_16 : f32 to vector<16x1xf32>
      %25 = arith.addf %23, %24 : vector<16x1xf32>
      %26 = math.rsqrt %25 : vector<16x1xf32>
      %27 = vector.broadcast %26 : vector<16x1xf32> to vector<16x32xf32>
      %28 = arith.mulf %18, %27 : vector<16x32xf32>
      %c0_17 = arith.constant 0 : index
      %c0_18 = arith.constant 0 : index
      %29 = vector.load %arg3[%c0_17, %c0_18] : memref<1x32xf32, #tpu.memory_space<vmem>>, vector<1x32xf32>
      %30 = vector.broadcast %29 : vector<1x32xf32> to vector<16x32xf32>
      %31 = arith.mulf %28, %30 : vector<16x32xf32>
      %c0_19 = arith.constant 0 : index
      %c0_20 = arith.constant 0 : index
      %32 = vector.load %arg4[%c0_19, %c0_20] : memref<1x32xf32, #tpu.memory_space<vmem>>, vector<1x32xf32>
      %33 = vector.broadcast %32 : vector<1x32xf32> to vector<16x32xf32>
      %34 = arith.addf %31, %33 : vector<16x32xf32>
      %35 = arith.truncf %34 : vector<16x32xf32> to vector<16x32xbf16>
      %c0_21 = arith.constant 0 : index
      %c0_22 = arith.constant 0 : index
      %36 = vector.load %arg8[%c0_21, %c0_22] : memref<16x32xbf16, #tpu.memory_space<vmem>>, vector<16x32xbf16>
      tpu.vector_store %arg8[%c0_21, %c0_22], %35 {strides = array<i32>} : memref<16x32xbf16, #tpu.memory_space<vmem>>, vector<16x32xbf16>,
    } else {
    }
    %c0 = arith.constant 0 : index
    %c0_1 = arith.constant 0 : index
    %3 = vector.load %arg8[%c0, %c0_1] : memref<16x32xbf16, #tpu.memory_space<vmem>>, vector<16x32xbf16>
    %c0_2 = arith.constant 0 : index
    %c0_3 = arith.constant 0 : index
    %4 = vector.load %arg5[%c0_2, %c0_3] : memref<32x32xbf16, #tpu.memory_space<vmem>>, vector<32x32xbf16>
    %cst = arith.constant dense<0.000000e+00> : vector<16x32xf32>
    %5 = tpu.matmul %3, %4, %cst {dimension_numbers = #tpu.dot_dimension_numbers<[1], [0], [0], [1], [0, 0, 1, 1], [], []>} : vector<16x32xbf16>, vector<32x32xbf16>, vector<16x32xf32> -> vector<16x32xf32>
    %c0_4 = arith.constant 0 : index
    %c0_5 = arith.constant 0 : index
    %6 = vector.load %arg6[%c0_4, %c0_5] : memref<1x32xf32, #tpu.memory_space<vmem>>, vector<1x32xf32>
    %7 = vector.broadcast %6 : vector<1x32xf32> to vector<16x32xf32>
    %8 = arith.addf %5, %7 : vector<16x32xf32>
    %c0_6 = arith.constant 0 : index
    %c0_7 = arith.constant 0 : index
    %9 = vector.load %arg2[%c0_6, %c0_7] : memref<16x32xf32, #tpu.memory_space<vmem>>, vector<16x32xf32>
    %10 = arith.addf %8, %9 : vector<16x32xf32>
    %c0_8 = arith.constant 0 : index
    %c0_9 = arith.constant 0 : index
    %11 = vector.load %arg7[%c0_8, %c0_9] : memref<16x32xf32, #tpu.memory_space<vmem>>, vector<16x32xf32>
    tpu.vector_store %arg7[%c0_8, %c0_9], %10 {strides = array<i32>} : memref<16x32xf32, #tpu.memory_space<vmem>>, vector<16x32xf32>,
    return
  }
  func.func @transform_0(%arg0: i32, %arg1: i32) -> (i32, i32) {
    %c0_i32 = arith.constant 0 : i32
    %c0_i32_0 = arith.constant 0 : i32
    return %arg0, %c0_i32 : i32, i32
  }
  func.func @transform_1(%arg0: i32, %arg1: i32) -> (i32, i32) {
    %c0_i32 = arith.constant 0 : i32
    %c0_i32_0 = arith.constant 0 : i32
    %c0_i32_1 = arith.constant 0 : i32
    return %c0_i32, %c0_i32_0 : i32, i32
  }
  func.func @transform_2(%arg0: i32, %arg1: i32) -> (i32, i32) {
    %c0_i32 = arith.constant 0 : i32
    %c0_i32_0 = arith.constant 0 : i32
    %c0_i32_1 = arith.constant 0 : i32
    return %c0_i32, %c0_i32_0 : i32, i32
  }
  func.func @transform_3(%arg0: i32, %arg1: i32) -> (i32, i32) {
    %c0_i32 = arith.constant 0 : i32
    %c0_i32_0 = arith.constant 0 : i32
    return %c0_i32, %arg1 : i32, i32
  }
  func.func @transform_4(%arg0: i32, %arg1: i32) -> (i32, i32) {
    %c0_i32 = arith.constant 0 : i32
    %c0_i32_0 = arith.constant 0 : i32
    return %c0_i32, %arg1 : i32, i32
  }
  func.func @transform_5(%arg0: i32, %arg1: i32) -> (i32, i32) {
    %c0_i32 = arith.constant 0 : i32
    return %arg0, %arg1 : i32, i32
  }
}

</mosaic_0001>

<bundles_post_ra>
// kernel: tpu_custom_call.1
= control target key start
LH: loop header
LB: loop body
LE: loop exit
PB: predicated region body
PF: predicated region fallthrough
CT: control target
= control target key end

     0   :  { %10 = vsyncpa [#allocation4], 0  ;;  %s386_s0 = inlined_call_operand.hbm [shape: f32[16,32], index: 0, kind: input, shape index: {}]   ;;  %s387_s1 = inlined_call_operand.vmem [shape: f32[1,32], index: 1, kind: input, shape index: {}]   ;;  %s388_s2 = inlined_call_operand.vmem [shape: f32[1,32], index: 2, kind: input, shape index: {}]   ;;  %s389_s3 = inlined_call_operand.hbm [shape: bf16[32,32], index: 3, kind: input, shape index: {}]   ;;  %s390_s4 = inlined_call_operand.vmem [shape: f32[1,32], index: 4, kind: input, shape index: {}]   ;;  %s391_s5 = inlined_call_operand.hbm [shape: f32[16,32], index: 5, kind: output, shape index: {}]  }
   0x1   :  { %11 = vsyncpa [#allocation7], 0 }
   0x2   :  { %12 = vsyncpa [#allocation5], 0  ;;  %s316_s18 = smov [#allocation3]  }
   0x3   :  { %s18_s19 = sshll.u32 %s316_s18, 4  ;;  %s19_s19 = int_to_ptr.vmem [resolvable:$true] %s18_s19 }
   0x4   :  { %s258_s20 = scalar_lea.vmem %s19_s19, 256  ;;  %p263_p1 = scmp.lt.s32.totalorder %s19_s19, %s19_s19 }
   0x5   :  { %p259_p0 = scmp.ne.s32.totalorder %s19_s19, %s258_s20  ;;  %p264_p2 = scmp.lt.s32.totalorder %s258_s20, %s258_s20 }
   0x7   :  { %p265_p3 = por %p264_p2, %p263_p1 }
   0x9   :  { %p266_p4 = pnand %p265_p3, %p259_p0 }
   0xb   :  { %269 = shalt.err (!%p266_p4)
}
   0xc   :  { %s317_s21 = smov 128   ;;  %s318_s22 = smov 8  }
   0xd   :  { %24 = dma.hbm_to_vmem [thread:$0]  %s386_s0, 256, %s19_s19, [#allocation4], %s317_s21, %s317_s21, %s318_s22  }
   0xe   :  { %s319_s25 = smov [#allocation6]  }
   0xf   :  { %s34_s26 = sshll.u32 %s319_s25, 4  ;;  %s35_s26 = int_to_ptr.vmem [resolvable:$true] %s34_s26 }
  0x10   :  { %s278_s27 = scalar_lea.vmem %s35_s26, 256  ;;  %p283_p6 = scmp.lt.s32.totalorder %s35_s26, %s35_s26 }
  0x11   :  { %p279_p5 = scmp.ne.s32.totalorder %s35_s26, %s278_s27  ;;  %p284_p7 = scmp.lt.s32.totalorder %s278_s27, %s278_s27 }
  0x13   :  { %p285_p8 = por %p284_p7, %p283_p6 }
  0x15   :  { %p286_p9 = pnand %p285_p8, %p279_p5 }
  0x17   :  { %289 = shalt.err (!%p286_p9)
}
  0x18   :  { %s320_s28 = smov 64   ;;  %s321_s29 = smov 4  }
  0x19   :  { %40 = dma.hbm_to_vmem [thread:$0]  %s389_s3, 256, %s35_s26, [#allocation7], %s320_s28, %s320_s28, %s321_s29  }
  0x1a   :  { %310 = dma.done.wait [#allocation4], 256  }
  0x1b   :  { %311 = vsyncadd [#allocation4], 4294967040 }
  0x1c   :  { %312 = dma.done.wait [#allocation7], 256  }
  0x1d   :  { %313 = vsyncadd [#allocation7], 4294967040  ;;  %vm56_vm0 = vcmask 261120   ;;  %v54_v0 = vld [vmem:[#allocation3] sm:$0xff]  ;;  %v55_v1 = vld [vmem:[#allocation3 + $0x8] sm:$0xff]  ;;  %v322_v15 = vmov 0.0  }
  0x1e   :  { %v57_v2 = vsel %vm56_vm0, %v54_v0, 0.0  ;;  %v60_v3 = vsel %vm56_vm0, %v55_v1, 0.0  ;;  %v243_v14 = vld [vmem:[#allocation6 + $0x8] sm:$0xff]   ;;  %226 = vmatprep.subr.bf16.mxu0 %v322_v15  ;;  %vm323_vm1 = vmmov 0   ;;  %v244_v16 = vld [vmem:[#allocation6] sm:$0xff]   ;;  %vm110_vm2 = vcmask 257024  }
  0x1f   :  { %58 = vadd.xlane.f32.xlu0 %v57_v2  ;;  %230 = vmatprep.mubr.msk.bf16.mxu0 %vm323_vm1, %v322_v15  ;;  %v212_v24 = vld [vmem:[%s387_s1] ss:$0 sm:$0xff] }
  0x20   :  { %227 = vmatpush3.bf16.msra.mxu0 %v243_v14  ;;  %v213_v26 = vld [vmem:[%s388_s2] ss:$0 sm:$0xff]  ;;  %s324_s2 = smov [#allocation8]  }
  0x21   :  { %228 = vmatprep.subr.bf16.mxu0 %v322_v15  ;;  %v216_v36 = vld [vmem:[%s390_s4] ss:$0 sm:$0xff]  ;;  %s199_s10 = sshll.u32 %s324_s2, 4  ;;  %s200_s10 = int_to_ptr.vmem [resolvable:$true] %s199_s10 }
  0x22   :  { %s290_s11 = scalar_lea.vmem %s200_s10, 256  ;;  %p295_p11 = scmp.lt.s32.totalorder %s200_s10, %s200_s10 }
  0x23   :  { %61 = vadd.xlane.f32.xlu0 %v60_v3  ;;  %p291_p10 = scmp.ne.s32.totalorder %s200_s10, %s290_s11  ;;  %p296_p12 = scmp.lt.s32.totalorder %s290_s11, %s290_s11 }
  0x24   :  { %229 = vmatpush3.bf16.msra.mxu0 %v244_v16 }
  0x25   :  { %p297_p13 = por %p296_p12, %p295_p11 }
  0x27   :  { %p298_p0 = pnand %p297_p13, %p291_p10 }
  0xa8   :  { %v59_v4 = vpop.xlane.xlu0 %58 }
  0xa9   :  { %v64_v5 = vmul.f32 0.03125, %v59_v4 }
  0xab   :  { %v66_v6 = vsub.f32 %v54_v0, %v64_v5 }
  0xac   :  { %v62_v7 = vpop.xlane.xlu0 %61 }
  0xad   :  { %v65_v8 = vmul.f32 0.03125, %v62_v7  ;;  %v68_v9 = vmul.f32 %v66_v6, %v66_v6 }
  0xaf   :  { %v67_v10 = vsub.f32 %v55_v1, %v65_v8  ;;  %v70_v11 = vsel %vm56_vm0, %v68_v9, 0.0 }
  0xb0   :  { %71 = vadd.xlane.f32.xlu1 %v70_v11 }
  0xb1   :  { %v69_v12 = vmul.f32 %v67_v10, %v67_v10 }
  0xb3   :  { %v73_v13 = vsel %vm56_vm0, %v69_v12, 0.0 }
  0xb4   :  { %74 = vadd.xlane.f32.xlu1 %v73_v13 }
 0x139   :  { %v72_v17 = vpop.xlane.xlu1 %71 }
 0x13a   :  { %v76_v18 = vmul.f32 0.03125, %v72_v17 }
 0x13c   :  { %v78_v19 = vadd.f32 1e-05, %v76_v18 }
 0x13d   :  { %v75_v20 = vpop.xlane.xlu1 %74 }
 0x13e   :  { %246 = vrsqrt.f32 %v78_v19  ;;  %v77_v21 = vmul.f32 0.03125, %v75_v20 }
 0x140   :  { %v79_v22 = vadd.f32 1e-05, %v77_v21 }
 0x142   :  { %248 = vrsqrt.f32 %v79_v22 }
 0x14b   :  { %v247_v23 = vpop.eup %246 }
 0x14c   :  { %v82_v25 = vmul.f32 %v247_v23, %v66_v6 }
 0x14e   :  { %v91_v27 = vmul.f32 %v212_v24, %v82_v25 }
 0x14f   :  { %v249_v28 = vpop.eup %248 }
 0x150   :  { %v100_v29 = vadd.f32 %v213_v26, %v91_v27  ;;  %v83_v30 = vmul.f32 %v249_v28, %v67_v10 }
 0x152   :  { %v221_v31 = vpack.c.bf16 %v100_v29, %v100_v29  ;;  %v92_v32 = vmul.f32 %v212_v24, %v83_v30 }
 0x154   :  { %111 = vst.msk [vmem:[#allocation2] sm:$0xf] %vm110_vm2, %v221_v31  ;;  %v101_v33 = vadd.f32 %v213_v26, %v92_v32 }
 0x156   :  { %v222_v34 = vpack.c.bf16 %v101_v33, %v101_v33 }
 0x158   :  { %112 = vst.msk [vmem:[#allocation2 + $0x4] sm:$0xf] %vm110_vm2, %v222_v34 }
 0x15f   :  { %v245_v35 = vld [vmem:[#allocation2] sm:$0xff]  }
 0x160   :  { %231 = vmatmul.mubr.msk.bf16.vlgmr.msra.gmra.mxu0 %vm56_vm0, %v245_v35 }
 0x220   :  { %v181_v37 = vpop.f32.mrf.mxu0 }
 0x221   :  { %v182_v38 = vadd.f32 %v216_v36, %v181_v37 }
 0x222   :  { %v232_v39 = vpop.f32.mrf.mxu0 }
 0x223   :  { %v190_v40 = vadd.f32 %v182_v38, %v54_v0 }
 0x224   :  { %v184_v41 = vpop.f32.mrf.mxu0 }
 0x225   :  { %192 = vst.msk [vmem:[#allocation8] sm:$0xff] %vm56_vm0, %v190_v40  ;;  %v185_v42 = vadd.f32 %v216_v36, %v184_v41 }
 0x226   :  { %v233_v43 = vpop.f32.mrf.mxu0 }
 0x227   :  { %v191_v44 = vadd.f32 %v185_v42, %v55_v1 }
 0x229   :  { %193 = vst.msk [vmem:[#allocation8 + $0x8] sm:$0xff] %vm56_vm0, %v191_v44 }
 0x22a   :  { %301 = shalt.err (!%p298_p0)
}
 0x22b   :  { %205 = dma.vmem_to_hbm [thread:$0]  %s200_s10, 256, %s391_s5, [#allocation5], %s317_s21, %s317_s21, %s318_s22  }
 0x22c   :  { %314 = dma.done.wait [#allocation5], 256  }
 0x22d   :  { %315 = vsyncadd [#allocation5], 4294967040 }
 0x22e   :  { %209 = vsyncpa [#allocation4], 1 }
 0x22f   :  { %210 = vsyncpa [#allocation7], 1 }
 0x230   :  { %211 = vsyncpa [#allocation5], 1 }

</bundles_post_ra>
